<compile_context>
chip_gen: v7x
topology: tpu7x:2x2x1
jax: 0.10.0
libtpu: 0.0.40
codegen_flags: <defaults>
</compile_context>

<pallas_src>
import functools

import jax
import jax.numpy as jnp
from jax.experimental import pallas as pl
from jax.experimental.pallas import tpu as pltpu

HIDDEN = 30        # fixed by the module definition
HIDDEN_PAD = 32    # padded to a multiple of 8 (zero-fill is exact through ReLU/W2)
GROUP = 8          # batch rows folded onto the lane axis (row-major reshape = bitcast)


def _round_up(x, m):
    return (x + m - 1) // m * m


def _mlp_kernel(x_ref, w1_ref, b1_ref, w2_ref, b2_ref, o_ref):
    # x_ref : [TR, 8*F]      (8 batch rows interleaved on the lane axis)
    # w1_ref: [8*F, 8*HP]    block-diagonal expansion of W1 (resident)
    # w2_ref: [8*HP, 8*O]    block-diagonal expansion of W2 (resident)
    # o_ref : [TR, 8*O]      natural-layout output block
    h = jnp.dot(x_ref[...], w1_ref[...], preferred_element_type=jnp.float32)
    h = jnp.maximum(h + b1_ref[...], 0.0)                      # bias + ReLU (f32, VPU)
    y = jnp.dot(h, w2_ref[...], preferred_element_type=jnp.float32)
    o_ref[...] = (y + b2_ref[...]).astype(o_ref.dtype)


@functools.partial(jax.jit, static_argnames=("tile_batch", "io_dtype"))
def net_forward(x, w1, b1, w2, b2, *, tile_batch=32768, io_dtype=None):
    """Forward pass of Net: y = relu(x @ W1 + b1) @ W2 + b2.

    x: [B, F]; w1: [F, 30]; b1: [30]; w2: [30, O]; b2: [O]  ->  [B, O]
    (weights stored pre-transposed relative to torch.nn.Linear).

    tile_batch: batch rows per grid step (default 32768 ~ 2.5 MiB/step of HBM
                traffic, ~15-22 MiB of VMEM at F=16 -- well under the 32 MiB cap).
    io_dtype:   optional (e.g. jnp.bfloat16) storage dtype for the streamed
                x / y to halve HBM bytes; accumulation stays f32.
    """
    B, F = x.shape
    O = w2.shape[1]

    if io_dtype is not None:
        x = x.astype(io_dtype)
    out_dtype = x.dtype

    # ---- Fold GROUP=8 batch rows onto the lane axis (free bitcast reshape). ----
    pad_rows = (-B) % GROUP
    if pad_rows:
        # Fallback: one zero-pad copy of x. The zero-copy path needs B % 8 == 0.
        x = jnp.pad(x, ((0, pad_rows), (0, 0)))
    Bp = B + pad_rows
    R = Bp // GROUP
    x_r = x.reshape(R, GROUP * F)                  # row-major reshape -> bitcast

    # ---- Block-diagonal weight expansion (tiny, ~0.3 MiB, built per call). ----
    w1p = jnp.zeros((F, HIDDEN_PAD), w1.dtype).at[:, :HIDDEN].set(w1)
    b1p = jnp.zeros((HIDDEN_PAD,), b1.dtype).at[:HIDDEN].set(b1)
    w2p = jnp.zeros((HIDDEN_PAD, O), w2.dtype).at[:HIDDEN, :].set(w2)
    eye = jnp.eye(GROUP, dtype=w1.dtype)
    w1e = jnp.kron(eye, w1p)                                   # [8F, 8*HP]
    w2e = jnp.kron(eye, w2p)                                   # [8*HP, 8*O]
    b1e = jnp.tile(b1p, GROUP).reshape(1, GROUP * HIDDEN_PAD)  # [1, 8*HP]
    b2e = jnp.tile(b2, GROUP).reshape(1, GROUP * O)            # [1, 8*O]

    # ---- Balanced batch tiling over the folded-row axis R. ----
    TR_MAX = max(8, tile_batch // GROUP)           # folded rows per grid step
    ntiles = pl.cdiv(R, TR_MAX)
    if R >= 64:                                    # B >= 512: keep >=2 steps so v7x's
        ntiles = max(ntiles, 2)                    # two TensorCores both stream HBM
    TR = _round_up(pl.cdiv(R, ntiles), 8)          # sublane-aligned block rows
    if TR >= R:
        TR = R                                     # single block == full dim (legal)
    grid = (pl.cdiv(R, TR),)                       # last block may be partial:
                                                   # padded reads / dropped writes;
                                                   # rows are independent, so exact.

    GF, GH, GO = GROUP * F, GROUP * HIDDEN_PAD, GROUP * O

    out_r = pl.pallas_call(
        _mlp_kernel,
        out_shape=jax.ShapeDtypeStruct((R, GO), out_dtype),
        grid=grid,
        in_specs=[
            pl.BlockSpec((TR, GF), lambda i: (i, 0)),   # streamed x, double-buffered
            pl.BlockSpec((GF, GH), lambda i: (0, 0)),   # resident expanded W1
            pl.BlockSpec((1, GH), lambda i: (0, 0)),    # resident expanded b1
            pl.BlockSpec((GH, GO), lambda i: (0, 0)),   # resident expanded W2
            pl.BlockSpec((1, GO), lambda i: (0, 0)),    # resident expanded b2
        ],
        out_specs=pl.BlockSpec((TR, GO), lambda i: (i, 0)),    # natural-layout output
        compiler_params=pltpu.CompilerParams(
            dimension_semantics=("parallel",),       # batch tiles: shardable on v7x
            vmem_limit_bytes=32 * 1024 * 1024,       # guardrail (v7x has 64 MiB phys)
        ),
    )(x_r, w1e, b1e, w2e, b2e)

    y = out_r.reshape(Bp, O)                       # free bitcast back to [B(+pad), O]
    if pad_rows:
        y = y[:B]
    return y


def init_params(key, n_feature, n_output):
    """Deterministic init mirroring torch.nn.Linear's uniform(-1/sqrt(in), 1/sqrt(in))."""
    k1, k2, k3, k4 = jax.random.split(key, 4)
    bound1 = 1.0 / jnp.sqrt(jnp.float32(n_feature))
    bound2 = 1.0 / jnp.sqrt(jnp.float32(HIDDEN))
    w1 = jax.random.uniform(k1, (n_feature, HIDDEN), jnp.float32, -bound1, bound1)
    b1 = jax.random.uniform(k2, (HIDDEN,), jnp.float32, -bound1, bound1)
    w2 = jax.random.uniform(k3, (HIDDEN, n_output), jnp.float32, -bound2, bound2)
    b2 = jax.random.uniform(k4, (n_output,), jnp.float32, -bound2, bound2)
    return w1, b1, w2, b2


if __name__ == "__main__":
    key = jax.random.PRNGKey(0)
    k_x, k_x2, k_p = jax.random.split(key, 3)

    n_feature, n_output = 16, 4
    w1, b1, w2, b2 = init_params(k_p, n_feature, n_output)

    def ref_forward(xx):
        # Reference in plain JAX: same math as the torch forward.
        return jnp.maximum(xx @ w1 + b1, 0.0) @ w2 + b2

    # Zero-copy path: batch a multiple of 8 (row-fold reshape is a bitcast).
    x = jax.random.normal(k_x, (64, n_feature), jnp.float32)
    out = jax.block_until_ready(net_forward(x, w1, b1, w2, b2))
    assert out.shape == (64, n_output)
    assert jnp.allclose(out, ref_forward(x), atol=1e-4, rtol=1e-4)

    # Fallback path: batch not a multiple of 8 (one pad copy, rows sliced off).
    x2 = jax.random.normal(k_x2, (10, n_feature), jnp.float32)
    out2 = jax.block_until_ready(net_forward(x2, w1, b1, w2, b2))
    assert out2.shape == (10, n_output)
    assert jnp.allclose(out2, ref_forward(x2), atol=1e-4, rtol=1e-4)

    print("KERNEL_OK")
</pallas_src>

<mosaic_0001>
module attributes {stable_mosaic.version = 11 : i64} {
  func.func @_mlp_kernel(%arg0: i32, %arg1: memref<8x128xf32, #tpu.memory_space<vmem>>, %arg2: memref<128x256xf32, #tpu.memory_space<vmem>>, %arg3: memref<1x256xf32, #tpu.memory_space<vmem>>, %arg4: memref<256x32xf32, #tpu.memory_space<vmem>>, %arg5: memref<1x32xf32, #tpu.memory_space<vmem>>, %arg6: memref<8x32xf32, #tpu.memory_space<vmem>>) attributes {dimension_semantics = [#tpu.dimension_semantics<parallel>], iteration_bounds = array<i64: 1>, scalar_prefetch = 0 : i64, scratch_operands = 0 : i64, tpu.core_type = #tpu.core_type<tc>, window_params = [{transform_indices = @transform_0, window_bounds = array<i64: 8, 128>}, {pipeline_mode = #tpu.pipeline_mode<synchronous>, transform_indices = @transform_1, window_bounds = array<i64: 128, 256>}, {pipeline_mode = #tpu.pipeline_mode<synchronous>, transform_indices = @transform_2, window_bounds = array<i64: 1, 256>}, {pipeline_mode = #tpu.pipeline_mode<synchronous>, transform_indices = @transform_3, window_bounds = array<i64: 256, 32>}, {pipeline_mode = #tpu.pipeline_mode<synchronous>, transform_indices = @transform_4, window_bounds = array<i64: 1, 32>}, {transform_indices = @transform_5, window_bounds = array<i64: 8, 32>}]} {
    %c0 = arith.constant 0 : index
    %c0_0 = arith.constant 0 : index
    %0 = vector.load %arg1[%c0, %c0_0] : memref<8x128xf32, #tpu.memory_space<vmem>>, vector<8x128xf32>
    %c0_1 = arith.constant 0 : index
    %c0_2 = arith.constant 0 : index
    %1 = vector.load %arg2[%c0_1, %c0_2] : memref<128x256xf32, #tpu.memory_space<vmem>>, vector<128x256xf32>
    %cst = arith.constant dense<0.000000e+00> : vector<8x256xf32>
    %2 = tpu.matmul %0, %1, %cst {dimension_numbers = #tpu.dot_dimension_numbers<[1], [0], [0], [1], [0, 0, 1, 1], [], []>} : vector<8x128xf32>, vector<128x256xf32>, vector<8x256xf32> -> vector<8x256xf32>
    %c0_3 = arith.constant 0 : index
    %c0_4 = arith.constant 0 : index
    %3 = vector.load %arg3[%c0_3, %c0_4] : memref<1x256xf32, #tpu.memory_space<vmem>>, vector<1x256xf32>
    %4 = vector.broadcast %3 : vector<1x256xf32> to vector<8x256xf32>
    %5 = arith.addf %2, %4 : vector<8x256xf32>
    %cst_5 = arith.constant 0.000000e+00 : f32
    %6 = vector.broadcast %cst_5 : f32 to vector<8x256xf32>
    %7 = arith.maximumf %5, %6 : vector<8x256xf32>
    %c0_6 = arith.constant 0 : index
    %c0_7 = arith.constant 0 : index
    %8 = vector.load %arg4[%c0_6, %c0_7] : memref<256x32xf32, #tpu.memory_space<vmem>>, vector<256x32xf32>
    %cst_8 = arith.constant dense<0.000000e+00> : vector<8x32xf32>
    %9 = tpu.matmul %7, %8, %cst_8 {dimension_numbers = #tpu.dot_dimension_numbers<[1], [0], [0], [1], [0, 0, 1, 1], [], []>} : vector<8x256xf32>, vector<256x32xf32>, vector<8x32xf32> -> vector<8x32xf32>
    %c0_9 = arith.constant 0 : index
    %c0_10 = arith.constant 0 : index
    %10 = vector.load %arg5[%c0_9, %c0_10] : memref<1x32xf32, #tpu.memory_space<vmem>>, vector<1x32xf32>
    %11 = vector.broadcast %10 : vector<1x32xf32> to vector<8x32xf32>
    %12 = arith.addf %9, %11 : vector<8x32xf32>
    %c0_11 = arith.constant 0 : index
    %c0_12 = arith.constant 0 : index
    %13 = vector.load %arg6[%c0_11, %c0_12] : memref<8x32xf32, #tpu.memory_space<vmem>>, vector<8x32xf32>
    tpu.vector_store %arg6[%c0_11, %c0_12], %12 {strides = array<i32>} : memref<8x32xf32, #tpu.memory_space<vmem>>, vector<8x32xf32>,
    return
  }
  func.func @transform_0(%arg0: i32) -> (i32, i32) {
    %c0_i32 = arith.constant 0 : i32
    %c0_i32_0 = arith.constant 0 : i32
    return %arg0, %c0_i32 : i32, i32
  }
  func.func @transform_1(%arg0: i32) -> (i32, i32) {
    %c0_i32 = arith.constant 0 : i32
    %c0_i32_0 = arith.constant 0 : i32
    %c0_i32_1 = arith.constant 0 : i32
    return %c0_i32, %c0_i32_0 : i32, i32
  }
  func.func @transform_2(%arg0: i32) -> (i32, i32) {
    %c0_i32 = arith.constant 0 : i32
    %c0_i32_0 = arith.constant 0 : i32
    %c0_i32_1 = arith.constant 0 : i32
    return %c0_i32, %c0_i32_0 : i32, i32
  }
  func.func @transform_3(%arg0: i32) -> (i32, i32) {
    %c0_i32 = arith.constant 0 : i32
    %c0_i32_0 = arith.constant 0 : i32
    %c0_i32_1 = arith.constant 0 : i32
    return %c0_i32, %c0_i32_0 : i32, i32
  }
  func.func @transform_4(%arg0: i32) -> (i32, i32) {
    %c0_i32 = arith.constant 0 : i32
    %c0_i32_0 = arith.constant 0 : i32
    %c0_i32_1 = arith.constant 0 : i32
    return %c0_i32, %c0_i32_0 : i32, i32
  }
  func.func @transform_5(%arg0: i32) -> (i32, i32) {
    %c0_i32 = arith.constant 0 : i32
    %c0_i32_0 = arith.constant 0 : i32
    return %arg0, %c0_i32 : i32, i32
  }
}

</mosaic_0001>

<bundles_post_ra>
// kernel: tile.13
= control target key start
LH: loop header
LB: loop body
LE: loop exit
PB: predicated region body
PF: predicated region fallthrough
CT: control target
= control target key end

     0   :  { %s22_s0 = inlined_call_operand.vmem [shape: f32[32], index: 0, kind: input, shape index: {}]   ;;  %s23_s1 = inlined_call_operand.vmem [shape: f32[8,32], index: 1, kind: output, shape index: {}]  }
   0x1   :  { %v4_v0 = vld [vmem:[%s22_s0] ss:$0 sm:$0xff] }
   0x2   :  { %5 = vst [vmem:[%s23_s1] sm:$0xff] %v4_v0 }

// kernel: tile.18
= control target key start
LH: loop header
LB: loop body
LE: loop exit
PB: predicated region body
PF: predicated region fallthrough
CT: control target
= control target key end

     0   :  { %s22_s0 = inlined_call_operand.vmem [shape: f32[4], index: 0, kind: input, shape index: {}]   ;;  %s23_s1 = inlined_call_operand.vmem [shape: f32[8,4], index: 1, kind: output, shape index: {}]  }
   0x1   :  { %v4_v0 = vld [vmem:[%s22_s0] ss:$0 sm:$0xff] }
   0x2   :  { %5 = vst [vmem:[%s23_s1] sm:$0xff] %v4_v0 }

// kernel: tile.14
= control target key start
LH: loop header
LB: loop body
LE: loop exit
PB: predicated region body
PF: predicated region fallthrough
CT: control target
= control target key end

     0   :  { %s7_s6 = smov 3  ;;  %s14_s9 = smov 3  ;;  %vm4_vm0 = vcmask 261120   ;;  %vm11_vm1 = vcmask 1048320   ;;  %vm18_vm2 = vcmask 785920   ;;  %vm25_vm3 = vcmask 523520   ;;  %s76_s0 = inlined_call_operand.vmem [shape: f32[8,32], index: 0, kind: input, shape index: {}]   ;;  %s77_s1 = inlined_call_operand.vmem [shape: f32[1,256], index: 1, kind: output, shape index: {}]  }
   0x1   :  { %v38_v0 = vld [vmem:[%s76_s0 + $0x3] ss:$4 sm:%s7_s6]   ;;  %s45_s10 = smov 96   ;;  %s21_s11 = smov 3  ;;  %v39_v1 = vld [vmem:[%s76_s0 + $0x2] ss:$4 sm:%s14_s9]  }
   0x2   :  { %9 = vrot.lane.b32.xlu0 %v38_v0, %s45_s10  ;;  %v40_v2 = vld [vmem:[%s76_s0 + $0x1] ss:$4 sm:%s21_s11]   ;;  %s2_s16 = smov 3  ;;  %s46_s17 = smov 32  }
   0x3   :  { %23 = vrot.lane.b32.xlu1 %v40_v2, %s46_s17  ;;  %v3_v3 = vld [vmem:[%s76_s0] ss:$4 sm:%s2_s16]   ;;  %s47_s0 = smov 64  }
   0x4   :  { %5 = vst.msk [vmem:[#allocation0] ss:$8 sm:$0x3] %vm4_vm0, %v3_v3  }
   0x6   :  { %16 = vrot.lane.b32.xlu0 %v39_v1, %s47_s0 }
  0x74   :  { %v10_v4 = vpop.permute.xlu0 %9  }
  0x75   :  { %12 = vst.msk [vmem:[#allocation0] ss:$8 sm:$0x3] %vm11_vm1, %v10_v4   ;;  %v24_v5 = vpop.permute.xlu1 %23  }
  0x78   :  { %v17_v6 = vpop.permute.xlu0 %16  }
  0x79   :  { %19 = vst.msk [vmem:[#allocation0] ss:$8 sm:$0x3] %vm18_vm2, %v17_v6  }
  0x7a   :  { %26 = vst.msk [vmem:[#allocation0] ss:$8 sm:$0x3] %vm25_vm3, %v24_v5  }
  0x81   :  { %v30_v7 = vld [vmem:[#allocation0] sm:$0x1]  ;;  %v34_v8 = vld [vmem:[#allocation0 + $0x8] sm:$0x1] }
  0x82   :  { %32 = vst [vmem:[%s77_s1] sm:$0x1] %v30_v7  ;;  %41 = vst [vmem:[%s77_s1 + $0x1] sm:$0x1] %v34_v8 }

// kernel: tile.19
= control target key start
LH: loop header
LB: loop body
LE: loop exit
PB: predicated region body
PF: predicated region fallthrough
CT: control target
= control target key end

     0   :  { %s67_s10 = smov 28   ;;  %s68_s11 = smov 20   ;;  %vm3_vm0 = vcmask 31744   ;;  %vm9_vm1 = vcmask 261344   ;;  %vm15_vm2 = vcmask 228544   ;;  %vm21_vm3 = vcmask 195744   ;;  %s111_s0 = inlined_call_operand.vmem [shape: f32[8,4], index: 0, kind: input, shape index: {}]   ;;  %s112_s1 = inlined_call_operand.vmem [shape: f32[1,32], index: 1, kind: output, shape index: {}]  }
   0x1   :  { %v53_v0 = vld [vmem:[%s111_s0 + $0x7] sm:$0x1]   ;;  %v55_v1 = vld [vmem:[%s111_s0 + $0x5] sm:$0x1]   ;;  %v54_v2 = vld [vmem:[%s111_s0 + $0x6] sm:$0x1]  }
   0x2   :  { %7 = vrot.lane.b32.xlu0 %v53_v0, %s67_s10  ;;  %19 = vrot.lane.b32.xlu1 %v55_v1, %s68_s11  ;;  %v56_v3 = vld [vmem:[%s111_s0 + $0x4] sm:$0x1]   ;;  %v2_v4 = vld [vmem:[%s111_s0] sm:$0x1]   ;;  %s69_s18 = smov 24   ;;  %s70_s19 = smov 16  }
   0x3   :  { %4 = vst.msk [vmem:[#allocation0] sm:$0x1] %vm3_vm0, %v2_v4   ;;  %v57_v5 = vld [vmem:[%s111_s0 + $0x3] sm:$0x1]   ;;  %v58_v6 = vld [vmem:[%s111_s0 + $0x2] sm:$0x1]  }
   0x4   :  { %s71_s24 = smov 12   ;;  %s72_s25 = smov 8   ;;  %v59_v7 = vld [vmem:[%s111_s0 + $0x1] sm:$0x1]   ;;  %vm27_vm4 = vcmask 162944   ;;  %vm33_vm5 = vcmask 130144  }
   0x5   :  { %s73_s0 = smov 4   ;;  %vm39_vm6 = vcmask 97344   ;;  %vm45_vm7 = vcmask 64544  }
   0x6   :  { %13 = vrot.lane.b32.xlu0 %v54_v2, %s69_s18  ;;  %25 = vrot.lane.b32.xlu1 %v56_v3, %s70_s19 }
   0xa   :  { %31 = vrot.lane.b32.xlu0 %v57_v5, %s71_s24  ;;  %37 = vrot.lane.b32.xlu1 %v58_v6, %s72_s25 }
   0xe   :  { %43 = vrot.lane.b32.xlu0 %v59_v7, %s73_s0 }
  0x74   :  { %v8_v8 = vpop.permute.xlu0 %7   ;;  %v20_v9 = vpop.permute.xlu1 %19  }
  0x75   :  { %10 = vst.msk [vmem:[#allocation0] sm:$0x1] %vm9_vm1, %v8_v8  }
  0x78   :  { %v14_v10 = vpop.permute.xlu0 %13   ;;  %v26_v11 = vpop.permute.xlu1 %25  }
  0x79   :  { %16 = vst.msk [vmem:[#allocation0] sm:$0x1] %vm15_vm2, %v14_v10  }
  0x7a   :  { %22 = vst.msk [vmem:[#allocation0] sm:$0x1] %vm21_vm3, %v20_v9  }
  0x7b   :  { %28 = vst.msk [vmem:[#allocation0] sm:$0x1] %vm27_vm4, %v26_v11  }
  0x7c   :  { %v32_v12 = vpop.permute.xlu0 %31   ;;  %v38_v13 = vpop.permute.xlu1 %37  }
  0x7d   :  { %34 = vst.msk [vmem:[#allocation0] sm:$0x1] %vm33_vm5, %v32_v12  }
  0x7e   :  { %40 = vst.msk [vmem:[#allocation0] sm:$0x1] %vm39_vm6, %v38_v13  }
  0x80   :  { %v44_v14 = vpop.permute.xlu0 %43  }
  0x81   :  { %46 = vst.msk [vmem:[#allocation0] sm:$0x1] %vm45_vm7, %v44_v14  }
  0x88   :  { %v50_v15 = vld [vmem:[#allocation0] sm:$0x1] }
  0x89   :  { %52 = vst [vmem:[%s112_s1] sm:$0x1] %v50_v15 }

// kernel: net_forward.1
= control target key start
LH: loop header
LB: loop body
LE: loop exit
PB: predicated region body
PF: predicated region fallthrough
CT: control target
= control target key end

     0   :  { %v354_v3 = vmov 0.0   ;;  %vm247_vm0 = vcmask 261120   ;;  %s589_s1 = inlined_call_operand.vmem [shape: f32[128,256], index: 1, kind: input, shape index: {}]   ;;  %s590_s3 = inlined_call_operand.vmem [shape: f32[256,32], index: 3, kind: input, shape index: {}]   ;;  %s591_s0 = inlined_call_operand.vmem [shape: f32[8,128], index: 0, kind: input, shape index: {}]   ;;  %s592_s2 = inlined_call_operand.vmem [shape: f32[1,256], index: 2, kind: input, shape index: {}]   ;;  %s593_s4 = inlined_call_operand.vmem [shape: f32[1,32], index: 4, kind: input, shape index: {}]   ;;  %s594_s5 = inlined_call_operand.vmem [shape: f32[8,32], index: 5, kind: output, shape index: {}]  }
   0x1   :  { %v22_v0 = vld [vmem:[%s589_s1 + $0x8] sm:$0xff]  ;;  %v24_v1 = vld [vmem:[%s589_s1 + $0x18] sm:$0xff]  ;;  %v21_v2 = vld [vmem:[%s589_s1] sm:$0xff]  ;;  %129 = vmatprep.mubr.f32.mxu0 %v354_v3 }
   0x2   :  { %v289_v4 = vpack.c.bf16 %v24_v1, %v22_v0  ;;  %v23_v5 = vld [vmem:[%s589_s1 + $0x10] sm:$0xff]  ;;  %v26_v6 = vld [vmem:[%s589_s1 + $0x28] sm:$0xff]  ;;  %v28_v7 = vld [vmem:[%s589_s1 + $0x38] sm:$0xff] }
   0x3   :  { %v291_v8 = vpack.c.bf16 %v23_v5, %v21_v2  ;;  %v293_v9 = vpack.c.bf16 %v28_v7, %v26_v6  ;;  %v25_v10 = vld [vmem:[%s589_s1 + $0x20] sm:$0xff]  ;;  %v27_v11 = vld [vmem:[%s589_s1 + $0x30] sm:$0xff]  ;;  %v30_v12 = vld [vmem:[%s589_s1 + $0x48] sm:$0xff] }
   0x4   :  { %290 = vmatprep.subr.bf16.mxu0 %v289_v4  ;;  %v32_v13 = vld [vmem:[%s589_s1 + $0x58] sm:$0xff]  ;;  %v295_v14 = vpack.c.bf16 %v27_v11, %v25_v10  ;;  %v29_v16 = vld [vmem:[%s589_s1 + $0x40] sm:$0xff]  ;;  %v31_v17 = vld [vmem:[%s589_s1 + $0x50] sm:$0xff] }
   0x5   :  { %292 = vmatpush1.bf16.msra.mxu0 %v291_v8  ;;  %v297_v15 = vpack.c.bf16 %v32_v13, %v30_v12  ;;  %v34_v18 = vld [vmem:[%s589_s1 + $0x68] sm:$0xff]  ;;  %v36_v19 = vld [vmem:[%s589_s1 + $0x78] sm:$0xff]  ;;  %v299_v20 = vpack.c.bf16 %v31_v17, %v29_v16  ;;  %v33_v22 = vld [vmem:[%s589_s1 + $0x60] sm:$0xff] }
   0x6   :  { %294 = vmatprep.subr.bf16.mxu0 %v293_v9  ;;  %v301_v21 = vpack.c.bf16 %v36_v19, %v34_v18  ;;  %v35_v23 = vld [vmem:[%s589_s1 + $0x70] sm:$0xff]  ;;  %v38_v24 = vld [vmem:[%s589_s1 + $0x88] sm:$0xff]  ;;  %v40_v25 = vld [vmem:[%s589_s1 + $0x98] sm:$0xff] }
   0x7   :  { %v37_v26 = vld [vmem:[%s589_s1 + $0x80] sm:$0xff]  ;;  %v39_v27 = vld [vmem:[%s589_s1 + $0x90] sm:$0xff]  ;;  %v155_v29 = vld [vmem:[%s590_s3 + $0x88] sm:$0xff]  ;;  %v303_v31 = vpack.c.bf16 %v35_v23, %v33_v22  ;;  %v305_v36 = vpack.c.bf16 %v40_v25, %v38_v24 }
   0x8   :  { %v154_v28 = vld [vmem:[%s590_s3 + $0x80] sm:$0xff]  ;;  %v139_v33 = vld [vmem:[%s590_s3 + $0x8] sm:$0xff]  ;;  %v156_v34 = vld [vmem:[%s590_s3 + $0x90] sm:$0xff]  ;;  %v307_v46 = vpack.c.bf16 %v39_v27, %v37_v26 }
   0x9   :  { %296 = vmatpush1.bf16.msra.mxu0 %v295_v14  ;;  %v138_v30 = vld [vmem:[%s590_s3] sm:$0xff]  ;;  %v321_v32 = vpack.c.bf16 %v155_v29, %v154_v28  ;;  %v157_v35 = vld [vmem:[%s590_s3 + $0x98] sm:$0xff]  ;;  %v140_v39 = vld [vmem:[%s590_s3 + $0x10] sm:$0xff] }
   0xa   :  { %298 = vmatprep.subr.bf16.mxu0 %v297_v15  ;;  %v323_v37 = vpack.c.bf16 %v139_v33, %v138_v30  ;;  %v325_v38 = vpack.c.bf16 %v157_v35, %v156_v34  ;;  %v141_v40 = vld [vmem:[%s590_s3 + $0x18] sm:$0xff]  ;;  %v158_v41 = vld [vmem:[%s590_s3 + $0xa0] sm:$0xff]  ;;  %v42_v42 = vld [vmem:[%s589_s1 + $0xa8] sm:$0xff]  ;;  %v55_v34 = vlaneseq }
   0xb   :  { %v44_v43 = vld [vmem:[%s589_s1 + $0xb8] sm:$0xff]  ;;  %322 = vmatprep.subr.bf16.mxu1 %v321_v32  ;;  %v159_v44 = vld [vmem:[%s590_s3 + $0xa8] sm:$0xff]  ;;  %v327_v45 = vpack.c.bf16 %v141_v40, %v140_v39  ;;  %v41_v47 = vld [vmem:[%s589_s1 + $0xa0] sm:$0xff] }
   0xc   :  { %324 = vmatpush3.bf16.msra.mxu1 %v323_v37  ;;  %v329_v48 = vpack.c.bf16 %v159_v44, %v158_v41  ;;  %v142_v49 = vld [vmem:[%s590_s3 + $0x20] sm:$0xff]  ;;  %v143_v50 = vld [vmem:[%s590_s3 + $0x28] sm:$0xff]  ;;  %v309_v51 = vpack.c.bf16 %v44_v43, %v42_v42  ;;  %v43_v52 = vld [vmem:[%s589_s1 + $0xb0] sm:$0xff]  ;;  %v56_v35 = vshrl.u32 %v55_v34, 7 }
   0xd   :  { %300 = vmatpush1.bf16.msra.mxu0 %v299_v20  ;;  %326 = vmatprep.subr.bf16.mxu1 %v325_v38  ;;  %v160_v53 = vld [vmem:[%s590_s3 + $0xb0] sm:$0xff]  ;;  %v161_v54 = vld [vmem:[%s590_s3 + $0xb8] sm:$0xff]  ;;  %v46_v55 = vld [vmem:[%s589_s1 + $0xc8] sm:$0xff]  ;;  %v331_v57 = vpack.c.bf16 %v143_v50, %v142_v49  ;;  %v311_v58 = vpack.c.bf16 %v43_v52, %v41_v47 }
   0xe   :  { %302 = vmatprep.subr.bf16.mxu0 %v301_v21  ;;  %v48_v56 = vld [vmem:[%s589_s1 + $0xd8] sm:$0xff]  ;;  %v45_v59 = vld [vmem:[%s589_s1 + $0xc0] sm:$0xff]  ;;  %v333_v60 = vpack.c.bf16 %v161_v54, %v160_v53  ;;  %v144_v61 = vld [vmem:[%s590_s3 + $0x30] sm:$0xff]  ;;  %v61_v38 = vsub.s32 1, %v56_v35 }
   0xf   :  { %v145_v62 = vld [vmem:[%s590_s3 + $0x38] sm:$0xff]  ;;  %v313_v63 = vpack.c.bf16 %v48_v56, %v46_v55  ;;  %v47_v0 = vld [vmem:[%s589_s1 + $0xd0] sm:$0xff]  ;;  %v162_v1 = vld [vmem:[%s590_s3 + $0xc0] sm:$0xff] }
  0x10   :  { %328 = vmatpush3.bf16.msra.mxu1 %v327_v45  ;;  %v163_v2 = vld [vmem:[%s590_s3 + $0xc8] sm:$0xff]  ;;  %v52_v4 = vld [vmem:[%s589_s1 + $0xf8] sm:$0xff]  ;;  %v335_v5 = vpack.c.bf16 %v145_v62, %v144_v61  ;;  %v315_v6 = vpack.c.bf16 %v47_v0, %v45_v59  ;;  %v49_v7 = vld [vmem:[%s589_s1 + $0xe0] sm:$0xff] }
  0x11   :  { %304 = vmatpush1.bf16.msra.mxu0 %v303_v31  ;;  %330 = vmatprep.subr.bf16.mxu1 %v329_v48  ;;  %v50_v3 = vld [vmem:[%s589_s1 + $0xe8] sm:$0xff]  ;;  %v337_v8 = vpack.c.bf16 %v163_v2, %v162_v1  ;;  %v146_v9 = vld [vmem:[%s590_s3 + $0x40] sm:$0xff]  ;;  %v51_v12 = vld [vmem:[%s589_s1 + $0xf0] sm:$0xff] }
  0x12   :  { %306 = vmatprep.subr.bf16.mxu0 %v305_v36  ;;  %v147_v10 = vld [vmem:[%s590_s3 + $0x48] sm:$0xff]  ;;  %v317_v11 = vpack.c.bf16 %v52_v4, %v50_v3  ;;  %v164_v13 = vld [vmem:[%s590_s3 + $0xd0] sm:$0xff]  ;;  %v165_v14 = vld [vmem:[%s590_s3 + $0xd8] sm:$0xff]  ;;  %v319_v16 = vpack.c.bf16 %v51_v12, %v49_v7  ;;  %v57_v36 = vsub.s32 0, %v56_v35 }
  0x13   :  { %v339_v15 = vpack.c.bf16 %v147_v10, %v146_v9  ;;  %v341_v17 = vpack.c.bf16 %v165_v14, %v164_v13  ;;  %v148_v18 = vld [vmem:[%s590_s3 + $0x50] sm:$0xff]  ;;  %v149_v19 = vld [vmem:[%s590_s3 + $0x58] sm:$0xff]  ;;  %v166_v20 = vld [vmem:[%s590_s3 + $0xe0] sm:$0xff] }
  0x14   :  { %332 = vmatpush3.bf16.msra.mxu1 %v331_v57  ;;  %v167_v21 = vld [vmem:[%s590_s3 + $0xe8] sm:$0xff]  ;;  %v343_v22 = vpack.c.bf16 %v149_v19, %v148_v18  ;;  %v20_v23 = vld [vmem:[%s591_s0] sm:$0xff]  ;;  %v168_v28 = vld [vmem:[%s590_s3 + $0xf0] sm:$0xff] }
  0x15   :  { %308 = vmatpush1.bf16.msra.mxu0 %v307_v46  ;;  %334 = vmatprep.subr.bf16.mxu1 %v333_v60  ;;  %v345_v24 = vpack.c.bf16 %v167_v21, %v166_v20  ;;  %v150_v25 = vld [vmem:[%s590_s3 + $0x60] sm:$0xff]  ;;  %v151_v26 = vld [vmem:[%s590_s3 + $0x68] sm:$0xff]  ;;  %v169_v29 = vld [vmem:[%s590_s3 + $0xf8] sm:$0xff] }
  0x16   :  { %310 = vmatprep.subr.bf16.mxu0 %v309_v51  ;;  %v347_v27 = vpack.c.bf16 %v151_v26, %v150_v25  ;;  %v349_v30 = vpack.c.bf16 %v169_v29, %v168_v28  ;;  %v152_v31 = vld [vmem:[%s590_s3 + $0x70] sm:$0xff]  ;;  %v153_v32 = vld [vmem:[%s590_s3 + $0x78] sm:$0xff]  ;;  %v53_v37 = vld [vmem:[%s592_s2] sm:$0x3] }
  0x17   :  { %v351_v33 = vpack.c.bf16 %v153_v32, %v152_v31  ;;  %v58_v39 = vrot.slane %v53_v37, %v57_v36  ;;  %v62_v40 = vrot.slane %v53_v37, %v61_v38  ;;  %v253_v48 = vld [vmem:[%s593_s4] ss:$0 sm:$0xff] }
  0x18   :  { %336 = vmatpush3.bf16.msra.mxu1 %v335_v5 }
  0x19   :  { %312 = vmatpush1.bf16.msra.mxu0 %v311_v58  ;;  %338 = vmatprep.subr.bf16.mxu1 %v337_v8 }
  0x1a   :  { %314 = vmatprep.subr.bf16.mxu0 %v313_v63 }
  0x1c   :  { %340 = vmatpush3.bf16.msra.mxu1 %v339_v15 }
  0x1d   :  { %316 = vmatpush1.bf16.msra.mxu0 %v315_v6  ;;  %342 = vmatprep.subr.bf16.mxu1 %v341_v17 }
  0x1e   :  { %318 = vmatprep.subr.bf16.mxu0 %v317_v11 }
  0x20   :  { %344 = vmatpush3.bf16.msra.mxu1 %v343_v22 }
  0x21   :  { %320 = vmatpush1.bf16.msra.mxu0 %v319_v16  ;;  %346 = vmatprep.subr.bf16.mxu1 %v345_v24 }
  0x24   :  { %130 = vmatmul.mubr.f32.vlgmr.msra.gmra.mrb[0].mxu0 %v20_v23  ;;  %348 = vmatpush3.bf16.msra.mxu1 %v347_v27 }
  0x25   :  { %350 = vmatprep.subr.bf16.mxu1 %v349_v30 }
  0x28   :  { %352 = vmatpush3.bf16.msra.mxu1 %v351_v33 }
  0xf7   :  { %v131_v41 = vpop.f32.mrb[0].mxu0 }
  0xf8   :  { %v132_v42 = vadd.f32 %v131_v41, %v58_v39  ;;  %v133_v43 = vpop.f32.mrb[1].mxu0 }
  0xf9   :  { %v134_v44 = vadd.f32 %v133_v43, %v62_v40 }
  0xfa   :  { %v136_v46 = vmax.f32 %v132_v42, 0.0 }
  0xfb   :  { %v137_v45 = vmax.f32 %v134_v44, 0.0 }
  0xfd   :  { %241 = vmatprep.mubr.f32.mxu1 %v137_v45 }
  0xfe   :  { %242 = vmatmul.mubr.f32.vlgmr.msra.gmra.mrb[0].mxu1 %v136_v46 }
 0x1d1   :  { %v286_v47 = vpop.f32.mrb[0].mxu1 }
 0x1d2   :  { %v287_v49 = vpop.f32.mrb[1].mxu1 }
 0x1d3   :  { %v288_v50 = vadd.f32 %v287_v49, %v286_v47 }
 0x1d5   :  { %v244_v51 = vadd.f32 %v288_v50, %v253_v48 }
 0x1d7   :  { %248 = vst.msk [vmem:[%s594_s5] sm:$0xff] %vm247_vm0, %v244_v51 }

</bundles_post_ra>
